<compile_context>
chip_gen: v5e
topology: v5e:2x2
jax: 0.10.0
libtpu: 0.0.40
codegen_flags: <defaults>
</compile_context>

<pallas_src>
import functools

import jax
import jax.numpy as jnp
from jax.experimental import pallas as pl
from jax.experimental.pallas import tpu as pltpu


# ------------------------------ sizing helpers --------------------------------

def _round_up(x, m):
    return ((x + m - 1) // m) * m


def _choose_tile(dim):
    """Descending tile ladder 512 -> 256 -> 128.

    Returns (tile, padded_dim). Prefers the biggest tile whose round-up padding
    stays within ~25% of the minimal 128-aligned padding.
    """
    base = _round_up(max(int(dim), 1), 128)
    for t in (512, 256):
        pad = _round_up(dim, t)
        if pad * 4 <= base * 5:      # <= 25% extra padding for a bigger tile
            return t, pad
    return 128, base


def _vmem_limit_bytes():
    # v7x has 64 MiB VMEM (vs 128 MiB on v5e/v6e); stay <= ~3/4 of capacity.
    try:
        cap = int(pltpu.get_tpu_info().vmem_capacity_bytes)
        return int(min(cap * 3 // 4, 100 * 1024 * 1024))
    except Exception:
        return 48 * 1024 * 1024


# --------------------- generic "A @ B [relu] [@ W]" kernel ---------------------
# A is streamed in (tm, tk) tiles; B (and W) stay fully VMEM-resident when they
# fit, so they are read from HBM once.  Optionally applies relu to the f32
# accumulator and a second small matmul (@ W) in the epilogue.

def _gc_matmul_kernel(*refs, nk, tk, b_resident, relu_inner, has_w):
    a_ref = refs[0]
    b_ref = refs[1]
    w_ref = refs[2] if has_w else None
    o_ref = refs[3] if has_w else refs[2]
    acc_ref = refs[-1] if nk > 1 else None

    def epilogue(acc):
        out = acc
        if relu_inner:
            out = jnp.maximum(out, 0.0)
        if has_w:
            out = jnp.dot(out.astype(w_ref.dtype), w_ref[...],
                          preferred_element_type=jnp.float32)
        o_ref[...] = out.astype(o_ref.dtype)

    if nk == 1:
        # K fits in one block: no accumulator scratch, write straight out.
        epilogue(jnp.dot(a_ref[...], b_ref[...],
                         preferred_element_type=jnp.float32))
    else:
        k = pl.program_id(1)

        @pl.when(k == 0)
        def _zero():
            acc_ref[...] = jnp.zeros_like(acc_ref)

        if b_resident:
            start = pl.multiple_of(k * tk, tk)
            b_blk = b_ref[pl.ds(start, tk), :]
        else:
            b_blk = b_ref[...]

        acc_ref[...] += jnp.dot(a_ref[...], b_blk,
                                preferred_element_type=jnp.float32)

        @pl.when(k == nk - 1)
        def _store():
            epilogue(acc_ref[...])


def _gc_matmul(a, b, w=None, *, tm, tk, relu_inner, out_dtype):
    """out = [relu](a @ b) [@ w].  a: (M, K), b: (K, Nb), w: (Nb, Nw)."""
    m, kdim = a.shape
    k2, bn = b.shape
    assert kdim == k2, (a.shape, b.shape)
    assert m % tm == 0 and kdim % tk == 0

    has_w = w is not None
    oc = int(w.shape[1]) if has_w else bn
    mt, nk = m // tm, kdim // tk

    # Keep B fully VMEM-resident when small enough; otherwise stream per k.
    b_resident = (kdim * bn * b.dtype.itemsize) <= 16 * 1024 * 1024

    in_specs = [pl.BlockSpec((tm, tk), lambda i, k: (i, k))]
    if b_resident:
        in_specs.append(pl.BlockSpec((kdim, bn), lambda i, k: (0, 0)))
    else:
        in_specs.append(pl.BlockSpec((tk, bn), lambda i, k: (k, 0)))
    operands = [a, b]
    if has_w:
        in_specs.append(pl.BlockSpec(tuple(w.shape), lambda i, k: (0, 0)))
        operands.append(w)

    scratch = [pltpu.VMEM((tm, bn), jnp.float32)] if nk > 1 else []

    flops = 2 * m * kdim * bn + (2 * m * bn * oc if has_w else 0)
    bytes_accessed = (m * kdim * a.dtype.itemsize
                      + (1 if b_resident else mt) * kdim * bn * b.dtype.itemsize
                      + (int(w.size) * w.dtype.itemsize if has_w else 0)
                      + m * oc * jnp.dtype(out_dtype).itemsize)

    kernel = functools.partial(
        _gc_matmul_kernel, nk=nk, tk=tk, b_resident=b_resident,
        relu_inner=relu_inner, has_w=has_w)

    return pl.pallas_call(
        kernel,
        out_shape=jax.ShapeDtypeStruct((m, oc), out_dtype),
        grid_spec=pltpu.PrefetchScalarGridSpec(
            num_scalar_prefetch=0,
            grid=(mt, nk),
            in_specs=in_specs,
            out_specs=pl.BlockSpec((tm, oc), lambda i, k: (i, 0)),
            scratch_shapes=scratch,
        ),
        compiler_params=pltpu.CompilerParams(
            dimension_semantics=("parallel", "arbitrary"),
            vmem_limit_bytes=_vmem_limit_bytes(),
        ),
        cost_estimate=pl.CostEstimate(
            flops=flops, transcendentals=0, bytes_accessed=bytes_accessed),
    )(*operands)


# ------------------- whole-GCN single-kernel path (small graphs) --------------

def _gcn_fused_kernel(x_ref, sup_ref, w1_ref, w2_ref, o_ref):
    bf = jnp.bfloat16
    xw1 = jnp.dot(x_ref[...], w1_ref[...], preferred_element_type=jnp.float32)
    h = jnp.maximum(
        jnp.dot(sup_ref[...], xw1.astype(bf),
                preferred_element_type=jnp.float32), 0.0)
    xw2 = jnp.dot(h.astype(bf), w2_ref[...], preferred_element_type=jnp.float32)
    y = jnp.maximum(
        jnp.dot(sup_ref[...], xw2.astype(bf),
                preferred_element_type=jnp.float32), 0.0)
    o_ref[...] = y.astype(o_ref.dtype)


def _gcn_fused(x_p, sup_p, w1_p, w2_p):
    np_, fp = x_p.shape
    hp = int(w1_p.shape[1])
    op = int(w2_p.shape[1])
    flops = (2 * np_ * fp * hp + 2 * np_ * np_ * hp
             + 2 * np_ * hp * op + 2 * np_ * np_ * op)
    bytes_accessed = 2 * (int(x_p.size) + int(sup_p.size) + int(w1_p.size)
                          + int(w2_p.size)) + np_ * op * 4
    return pl.pallas_call(
        _gcn_fused_kernel,
        out_shape=jax.ShapeDtypeStruct((np_, op), jnp.float32),
        grid_spec=pltpu.PrefetchScalarGridSpec(
            num_scalar_prefetch=0,
            grid=(1,),
            in_specs=[
                pl.BlockSpec((np_, fp), lambda i: (0, 0)),
                pl.BlockSpec((np_, np_), lambda i: (0, 0)),
                pl.BlockSpec((fp, hp), lambda i: (0, 0)),
                pl.BlockSpec((hp, op), lambda i: (0, 0)),
            ],
            out_specs=pl.BlockSpec((np_, op), lambda i: (0, 0)),
        ),
        compiler_params=pltpu.CompilerParams(
            dimension_semantics=("arbitrary",),
            vmem_limit_bytes=_vmem_limit_bytes(),
        ),
        cost_estimate=pl.CostEstimate(
            flops=flops, transcendentals=0, bytes_accessed=bytes_accessed),
    )(x_p, sup_p, w1_p, w2_p)


# --------------------------------- GCN forward --------------------------------

def gcn_forward(x, support, w1, w2, *, force_tiled=False):
    """GCN.forward((x, support)) in eval mode (no dropout, no bias).

    Both GraphConvolution layers apply relu (module default activation).
    Returns (output, support) like the torch module.
    """
    n, f = x.shape
    h_dim = int(w1.shape[1])
    o_dim = int(w2.shape[1])

    tile_n, np_ = _choose_tile(n)
    tile_f, fp = _choose_tile(f)
    hp = _round_up(h_dim, 128)
    op = _round_up(o_dim, 128)

    bf = jnp.bfloat16
    # TODO(synk): fold the bf16 cast + zero-pad into the kernel prologue
    # (remainder-tile masking) once support is single-pass, to avoid the extra
    # one-time HBM round-trip of sup_p.
    sup_p = jnp.zeros((np_, np_), bf).at[:n, :n].set(support.astype(bf))
    x_p = jnp.zeros((np_, fp), bf).at[:n, :f].set(x.astype(bf))
    w1_p = jnp.zeros((fp, hp), bf).at[:f, :h_dim].set(w1.astype(bf))
    w2_p = jnp.zeros((hp, op), bf).at[:h_dim, :o_dim].set(w2.astype(bf))

    # Single-kernel whole-GCN path: support + x + weights + intermediates all
    # VMEM-resident, support read from HBM exactly once, 1 launch total.
    fused_bytes = 2 * (np_ * np_ + np_ * fp + fp * hp + hp * op
                       + np_ * hp + np_ * op) + np_ * op * 4
    if not force_tiled and fused_bytes <= 20 * 1024 * 1024:
        y = _gcn_fused(x_p, sup_p, w1_p, w2_p)
        return y[:n, :o_dim], support

    # Tiled path (large graphs): big square support tiles, resident small
    # operands, layer-2 transform fused into layer-1's epilogue (h never hits
    # HBM), so support is streamed exactly twice (once per aggregation).
    tm = tile_n
    while np_ // tm < 2 and tm > 128:   # >= 2 parallel row tiles (v7x: 2 TCs)
        tm //= 2
    tk = tile_n

    xw1 = _gc_matmul(x_p, w1_p, tm=tm, tk=tile_f,
                     relu_inner=False, out_dtype=bf)            # x @ W1
    xw2 = _gc_matmul(sup_p, xw1, w2_p, tm=tm, tk=tk,
                     relu_inner=True, out_dtype=bf)             # relu(S@xw1)@W2
    y = _gc_matmul(sup_p, xw2, tm=tm, tk=tk,
                   relu_inner=True, out_dtype=jnp.float32)      # relu(S@xw2)
    return y[:n, :o_dim], support


# ----------------------- preprocessing (plain JAX glue) -----------------------

def preprocess_features_dense(feat):
    """Row-normalize the feature matrix (dense analogue of preprocess_features)."""
    rowsum = feat.sum(axis=1, keepdims=True)
    r_inv = jnp.where(rowsum > 0, 1.0 / rowsum, 0.0)
    return feat * r_inv


def preprocess_adj_dense(adj):
    """D^-1/2 (A + I) D^-1/2 (dense analogue of preprocess_adj/normalize_adj)."""
    n = adj.shape[0]
    a = adj + jnp.eye(n, dtype=adj.dtype)
    rowsum = a.sum(axis=1)
    d_inv_sqrt = jnp.where(rowsum > 0, rowsum ** -0.5, 0.0)
    return (a * d_inv_sqrt[None, :]).T * d_inv_sqrt[None, :]


# ----------------------------------- main --------------------------------------

if __name__ == "__main__":
    key = jax.random.PRNGKey(0)
    keys = jax.random.split(key, 8)

    def make_problem(kf, ka, kw1, kw2, n, in_dim, hidden, out_dim,
                     feat_thresh, adj_thresh):
        feat_raw = (jax.random.uniform(kf, (n, in_dim)) > feat_thresh
                    ).astype(jnp.float32)
        x = preprocess_features_dense(feat_raw)
        a_rand = (jax.random.uniform(ka, (n, n)) > adj_thresh).astype(jnp.float32)
        adj = jnp.maximum(a_rand, a_rand.T) * (1.0 - jnp.eye(n, dtype=jnp.float32))
        support = preprocess_adj_dense(adj)
        w1 = jax.random.normal(kw1, (in_dim, hidden), dtype=jnp.float32)
        w2 = jax.random.normal(kw2, (hidden, out_dim), dtype=jnp.float32)
        return x, support, w1, w2

    def matched_ref(x, support, w1, w2):
        # Same precision policy as the kernels: bf16 MXU inputs, f32 accumulate.
        bf, f32 = jnp.bfloat16, jnp.float32
        xw1 = jnp.dot(x.astype(bf), w1.astype(bf),
                      preferred_element_type=f32).astype(bf)
        h = jnp.maximum(jnp.dot(support.astype(bf), xw1,
                                preferred_element_type=f32), 0.0)
        xw2 = jnp.dot(h.astype(bf), w2.astype(bf),
                      preferred_element_type=f32).astype(bf)
        return jnp.maximum(jnp.dot(support.astype(bf), xw2,
                                   preferred_element_type=f32), 0.0)

    def f32_ref(x, support, w1, w2):
        h = jnp.maximum(support @ (x @ w1), 0.0)
        return jnp.maximum(support @ (h @ w2), 0.0)

    # --- small problem: fully fused single-kernel path ---
    N, INPUT_DIM, HIDDEN, OUTPUT_DIM = 16, 8, 32, 4
    x, support, w1, w2 = make_problem(keys[0], keys[1], keys[2], keys[3],
                                      N, INPUT_DIM, HIDDEN, OUTPUT_DIM, 0.6, 0.7)
    out, _ = jax.jit(gcn_forward)(x, support, w1, w2)
    jax.block_until_ready(out)
    assert out.shape == (N, OUTPUT_DIM)
    assert jnp.allclose(out, matched_ref(x, support, w1, w2), atol=2e-2, rtol=2e-2)
    assert jnp.allclose(out, f32_ref(x, support, w1, w2), atol=0.15, rtol=0.15)

    # --- medium problem: forced onto the tiled multi-kernel path ---
    N2, F2, H2, O2 = 700, 150, 96, 10
    x2, support2, w3, w4 = make_problem(keys[4], keys[5], keys[6], keys[7],
                                        N2, F2, H2, O2, 0.8, 0.9)
    tiled_fwd = jax.jit(functools.partial(gcn_forward, force_tiled=True))
    out2, _ = tiled_fwd(x2, support2, w3, w4)
    jax.block_until_ready(out2)
    assert out2.shape == (N2, O2)
    ref2 = matched_ref(x2, support2, w3, w4)
    err = jnp.linalg.norm(out2 - ref2) / (jnp.linalg.norm(ref2) + 1e-6)
    assert err < 1e-2, err
    ref2_f32 = f32_ref(x2, support2, w3, w4)
    err_f32 = jnp.linalg.norm(out2 - ref2_f32) / (jnp.linalg.norm(ref2_f32) + 1e-6)
    assert err_f32 < 5e-2, err_f32

    # TODO(synk): sparse_dropout / F.dropout only run in training mode; this
    # eval-mode forward pass does not apply dropout.
    print("KERNEL_OK")
</pallas_src>

<mosaic_0001>
module attributes {stable_mosaic.version = 11 : i64} {
  func.func @_gcn_fused_kernel(%arg0: i32, %arg1: memref<128x128xbf16, #tpu.memory_space<vmem>>, %arg2: memref<128x128xbf16, #tpu.memory_space<vmem>>, %arg3: memref<128x128xbf16, #tpu.memory_space<vmem>>, %arg4: memref<128x128xbf16, #tpu.memory_space<vmem>>, %arg5: memref<128x128xf32, #tpu.memory_space<vmem>>) attributes {dimension_semantics = [#tpu.dimension_semantics<arbitrary>], iteration_bounds = array<i64: 1>, scalar_prefetch = 0 : i64, scratch_operands = 0 : i64, tpu.core_type = #tpu.core_type<tc>, window_params = [{pipeline_mode = #tpu.pipeline_mode<synchronous>, transform_indices = @transform_0, window_bounds = array<i64: 128, 128>}, {pipeline_mode = #tpu.pipeline_mode<synchronous>, transform_indices = @transform_1, window_bounds = array<i64: 128, 128>}, {pipeline_mode = #tpu.pipeline_mode<synchronous>, transform_indices = @transform_2, window_bounds = array<i64: 128, 128>}, {pipeline_mode = #tpu.pipeline_mode<synchronous>, transform_indices = @transform_3, window_bounds = array<i64: 128, 128>}, {pipeline_mode = #tpu.pipeline_mode<synchronous>, transform_indices = @transform_4, window_bounds = array<i64: 128, 128>}]} {
    %c0 = arith.constant 0 : index
    %c0_0 = arith.constant 0 : index
    %0 = vector.load %arg1[%c0, %c0_0] : memref<128x128xbf16, #tpu.memory_space<vmem>>, vector<128x128xbf16>
    %c0_1 = arith.constant 0 : index
    %c0_2 = arith.constant 0 : index
    %1 = vector.load %arg3[%c0_1, %c0_2] : memref<128x128xbf16, #tpu.memory_space<vmem>>, vector<128x128xbf16>
    %cst = arith.constant dense<0.000000e+00> : vector<128x128xf32>
    %2 = tpu.matmul %0, %1, %cst {dimension_numbers = #tpu.dot_dimension_numbers<[1], [0], [0], [1], [0, 0, 1, 1], [], []>} : vector<128x128xbf16>, vector<128x128xbf16>, vector<128x128xf32> -> vector<128x128xf32>
    %c0_3 = arith.constant 0 : index
    %c0_4 = arith.constant 0 : index
    %3 = vector.load %arg2[%c0_3, %c0_4] : memref<128x128xbf16, #tpu.memory_space<vmem>>, vector<128x128xbf16>
    %4 = arith.truncf %2 : vector<128x128xf32> to vector<128x128xbf16>
    %cst_5 = arith.constant dense<0.000000e+00> : vector<128x128xf32>
    %5 = tpu.matmul %3, %4, %cst_5 {dimension_numbers = #tpu.dot_dimension_numbers<[1], [0], [0], [1], [0, 0, 1, 1], [], []>} : vector<128x128xbf16>, vector<128x128xbf16>, vector<128x128xf32> -> vector<128x128xf32>
    %cst_6 = arith.constant 0.000000e+00 : f32
    %6 = vector.broadcast %cst_6 : f32 to vector<128x128xf32>
    %7 = arith.maximumf %5, %6 : vector<128x128xf32>
    %8 = arith.truncf %7 : vector<128x128xf32> to vector<128x128xbf16>
    %c0_7 = arith.constant 0 : index
    %c0_8 = arith.constant 0 : index
    %9 = vector.load %arg4[%c0_7, %c0_8] : memref<128x128xbf16, #tpu.memory_space<vmem>>, vector<128x128xbf16>
    %cst_9 = arith.constant dense<0.000000e+00> : vector<128x128xf32>
    %10 = tpu.matmul %8, %9, %cst_9 {dimension_numbers = #tpu.dot_dimension_numbers<[1], [0], [0], [1], [0, 0, 1, 1], [], []>} : vector<128x128xbf16>, vector<128x128xbf16>, vector<128x128xf32> -> vector<128x128xf32>
    %c0_10 = arith.constant 0 : index
    %c0_11 = arith.constant 0 : index
    %11 = vector.load %arg2[%c0_10, %c0_11] : memref<128x128xbf16, #tpu.memory_space<vmem>>, vector<128x128xbf16>
    %12 = arith.truncf %10 : vector<128x128xf32> to vector<128x128xbf16>
    %cst_12 = arith.constant dense<0.000000e+00> : vector<128x128xf32>
    %13 = tpu.matmul %11, %12, %cst_12 {dimension_numbers = #tpu.dot_dimension_numbers<[1], [0], [0], [1], [0, 0, 1, 1], [], []>} : vector<128x128xbf16>, vector<128x128xbf16>, vector<128x128xf32> -> vector<128x128xf32>
    %cst_13 = arith.constant 0.000000e+00 : f32
    %14 = vector.broadcast %cst_13 : f32 to vector<128x128xf32>
    %15 = arith.maximumf %13, %14 : vector<128x128xf32>
    %c0_14 = arith.constant 0 : index
    %c0_15 = arith.constant 0 : index
    %16 = vector.load %arg5[%c0_14, %c0_15] : memref<128x128xf32, #tpu.memory_space<vmem>>, vector<128x128xf32>
    tpu.vector_store %arg5[%c0_14, %c0_15], %15 {strides = array<i32>} : memref<128x128xf32, #tpu.memory_space<vmem>>, vector<128x128xf32>,
    return
  }
  func.func @transform_0(%arg0: i32) -> (i32, i32) {
    %c0_i32 = arith.constant 0 : i32
    %c0_i32_0 = arith.constant 0 : i32
    %c0_i32_1 = arith.constant 0 : i32
    return %c0_i32, %c0_i32_0 : i32, i32
  }
  func.func @transform_1(%arg0: i32) -> (i32, i32) {
    %c0_i32 = arith.constant 0 : i32
    %c0_i32_0 = arith.constant 0 : i32
    %c0_i32_1 = arith.constant 0 : i32
    return %c0_i32, %c0_i32_0 : i32, i32
  }
  func.func @transform_2(%arg0: i32) -> (i32, i32) {
    %c0_i32 = arith.constant 0 : i32
    %c0_i32_0 = arith.constant 0 : i32
    %c0_i32_1 = arith.constant 0 : i32
    return %c0_i32, %c0_i32_0 : i32, i32
  }
  func.func @transform_3(%arg0: i32) -> (i32, i32) {
    %c0_i32 = arith.constant 0 : i32
    %c0_i32_0 = arith.constant 0 : i32
    %c0_i32_1 = arith.constant 0 : i32
    return %c0_i32, %c0_i32_0 : i32, i32
  }
  func.func @transform_4(%arg0: i32) -> (i32, i32) {
    %c0_i32 = arith.constant 0 : i32
    %c0_i32_0 = arith.constant 0 : i32
    %c0_i32_1 = arith.constant 0 : i32
    return %c0_i32, %c0_i32_0 : i32, i32
  }
}

</mosaic_0001>

<bundles_post_ra>
// kernel: gcn_forward.1
= control target key start
LH: loop header
LB: loop body
LE: loop exit
PB: predicated region body
PF: predicated region fallthrough
CT: control target
= control target key end

     0   :  { %s906_s2 = inlined_call_operand.vmem [shape: bf16[128,128], index: 2, kind: input, shape index: {}]   ;;  %s907_s0 = inlined_call_operand.vmem [shape: bf16[128,128], index: 0, kind: input, shape index: {}]   ;;  %s908_s1 = inlined_call_operand.vmem [shape: bf16[128,128], index: 1, kind: input, shape index: {}]   ;;  %s909_s3 = inlined_call_operand.vmem [shape: bf16[128,128], index: 3, kind: input, shape index: {}]   ;;  %s910_s4 = inlined_call_operand.vmem [shape: f32[128,128], index: 4, kind: output, shape index: {}]  }
   0x1   :  { %v688_v0 = vld [vmem:[%s906_s2 + $0x38] sm:$0xff]  ;;  %v687_v1 = vld [vmem:[%s906_s2 + $0x30] sm:$0xff]  ;;  %v686_v2 = vld [vmem:[%s906_s2 + $0x28] sm:$0xff] }
   0x2   :  { %145 = vmatpush.bf16.msra.mxu0 %v688_v0  ;;  %v685_v3 = vld [vmem:[%s906_s2 + $0x20] sm:$0xff]  ;;  %v684_v4 = vld [vmem:[%s906_s2 + $0x18] sm:$0xff]  ;;  %v683_v5 = vld [vmem:[%s906_s2 + $0x10] sm:$0xff] }
   0x3   :  { %v682_v6 = vld [vmem:[%s906_s2 + $0x8] sm:$0xff]  ;;  %v681_v7 = vld [vmem:[%s906_s2] sm:$0xff]  ;;  %v675_v10 = vld [vmem:[%s907_s0 + $0x10] sm:$0xff] }
   0x4   :  { %v673_v8 = vld [vmem:[%s907_s0] sm:$0xff]  ;;  %v674_v9 = vld [vmem:[%s907_s0 + $0x8] sm:$0xff]  ;;  %v676_v11 = vld [vmem:[%s907_s0 + $0x18] sm:$0xff] }
   0x5   :  { %v677_v12 = vld [vmem:[%s907_s0 + $0x20] sm:$0xff]  ;;  %v678_v13 = vld [vmem:[%s907_s0 + $0x28] sm:$0xff]  ;;  %v679_v14 = vld [vmem:[%s907_s0 + $0x30] sm:$0xff] }
   0x6   :  { %146 = vmatpush.bf16.msra.mxu0 %v687_v1  ;;  %v680_v15 = vld [vmem:[%s907_s0 + $0x38] sm:$0xff]  ;;  %v781_v40 = vld [vmem:[%s908_s1] sm:$0xff]  ;;  %v787_v41 = vld [vmem:[%s908_s1 + $0x8] sm:$0xff] }
   0x7   :  { %v793_v42 = vld [vmem:[%s908_s1 + $0x10] sm:$0xff]  ;;  %v799_v43 = vld [vmem:[%s908_s1 + $0x18] sm:$0xff]  ;;  %v805_v44 = vld [vmem:[%s908_s1 + $0x20] sm:$0xff] }
   0x8   :  { %v704_v45 = vld [vmem:[%s909_s3 + $0x38] sm:$0xff]  ;;  %v703_v46 = vld [vmem:[%s909_s3 + $0x30] sm:$0xff]  ;;  %v817_v47 = vld [vmem:[%s908_s1 + $0x28] sm:$0xff] }
   0x9   :  { %403 = vmatpush.bf16.msra.mxu2 %v704_v45  ;;  %v702_v48 = vld [vmem:[%s909_s3 + $0x28] sm:$0xff]  ;;  %v701_v49 = vld [vmem:[%s909_s3 + $0x20] sm:$0xff]  ;;  %v700_v50 = vld [vmem:[%s909_s3 + $0x18] sm:$0xff] }
   0xa   :  { %147 = vmatpush.bf16.msra.mxu0 %v686_v2  ;;  %v832_v51 = vld [vmem:[%s908_s1 + $0x30] sm:$0xff]  ;;  %v698_v53 = vld [vmem:[%s909_s3 + $0x8] sm:$0xff]  ;;  %v697_v54 = vld [vmem:[%s909_s3] sm:$0xff] }
   0xb   :  { %v699_v52 = vld [vmem:[%s909_s3 + $0x10] sm:$0xff]  ;;  %v847_v55 = vld [vmem:[%s908_s1 + $0x38] sm:$0xff] }
   0xd   :  { %404 = vmatpush.bf16.msra.mxu2 %v703_v46 }
   0xe   :  { %148 = vmatpush.bf16.msra.mxu0 %v685_v3 }
  0x11   :  { %405 = vmatpush.bf16.msra.mxu2 %v702_v48 }
  0x12   :  { %149 = vmatpush.bf16.msra.mxu0 %v684_v4 }
  0x15   :  { %406 = vmatpush.bf16.msra.mxu2 %v701_v49 }
  0x16   :  { %150 = vmatpush.bf16.msra.mxu0 %v683_v5 }
  0x19   :  { %407 = vmatpush.bf16.msra.mxu2 %v700_v50 }
  0x1a   :  { %151 = vmatpush.bf16.msra.mxu0 %v682_v6 }
  0x1d   :  { %408 = vmatpush.bf16.msra.mxu2 %v699_v52 }
  0x1e   :  { %152 = vmatpush.bf16.msra.mxu0 %v681_v7 }
  0x21   :  { %153 = vmatmul.bf16.vlgmr.msra.gmra.mxu0 %v673_v8  ;;  %409 = vmatpush.bf16.msra.mxu2 %v698_v53 }
  0x25   :  { %410 = vmatpush.bf16.msra.mxu2 %v697_v54 }
  0x31   :  { %158 = vmatmul.bf16.gmra.mxu0 %v674_v9 }
  0x41   :  { %163 = vmatmul.bf16.gmra.mxu0 %v675_v10 }
  0x51   :  { %168 = vmatmul.bf16.gmra.mxu0 %v676_v11 }
  0x61   :  { %173 = vmatmul.bf16.gmra.mxu0 %v677_v12 }
  0x71   :  { %178 = vmatmul.bf16.gmra.mxu0 %v678_v13 }
  0x81   :  { %183 = vmatmul.bf16.gmra.mxu0 %v679_v14 }
  0x91   :  { %188 = vmatmul.bf16.gmra.mxu0 %v680_v15 }
  0x9e   :  { %v154_v16 = vpop.f32.mrf.mxu0 }
  0xa6   :  { %v156_v17 = vpop.f32.mrf.mxu0 }
  0xa7   :  { %v210_v18 = vpack.c.bf16 %v156_v17, %v154_v16 }
  0xae   :  { %v159_v19 = vpop.f32.mrf.mxu0 }
  0xb6   :  { %v161_v20 = vpop.f32.mrf.mxu0 }
  0xb7   :  { %v211_v21 = vpack.c.bf16 %v161_v20, %v159_v19 }
  0xbe   :  { %v164_v22 = vpop.f32.mrf.mxu0 }
  0xc6   :  { %v166_v23 = vpop.f32.mrf.mxu0 }
  0xc7   :  { %v212_v24 = vpack.c.bf16 %v166_v23, %v164_v22 }
  0xce   :  { %v169_v25 = vpop.f32.mrf.mxu0 }
  0xd6   :  { %v171_v26 = vpop.f32.mrf.mxu0 }
  0xd7   :  { %v213_v27 = vpack.c.bf16 %v171_v26, %v169_v25 }
  0xde   :  { %v174_v28 = vpop.f32.mrf.mxu0 }
  0xe6   :  { %v176_v29 = vpop.f32.mrf.mxu0 }
  0xe7   :  { %v214_v39 = vpack.c.bf16 %v176_v29, %v174_v28 }
  0xee   :  { %v179_v30 = vpop.f32.mrf.mxu0 }
  0xf6   :  { %v181_v31 = vpop.f32.mrf.mxu0 }
  0xf7   :  { %v215_v38 = vpack.c.bf16 %v181_v31, %v179_v30 }
  0xfe   :  { %v184_v32 = vpop.f32.mrf.mxu0 }
 0x106   :  { %v186_v33 = vpop.f32.mrf.mxu0 }
 0x107   :  { %v216_v37 = vpack.c.bf16 %v186_v33, %v184_v32 }
 0x10e   :  { %v189_v34 = vpop.f32.mrf.mxu0 }
 0x116   :  { %v191_v35 = vpop.f32.mrf.mxu0 }
 0x117   :  { %v217_v36 = vpack.c.bf16 %v191_v35, %v189_v34 }
 0x119   :  { %266 = vmatpush.bf16.msra.mxu1 %v217_v36 }
 0x11d   :  { %267 = vmatpush.bf16.msra.mxu1 %v216_v37 }
 0x121   :  { %268 = vmatpush.bf16.msra.mxu1 %v215_v38 }
 0x125   :  { %269 = vmatpush.bf16.msra.mxu1 %v214_v39 }
 0x129   :  { %270 = vmatpush.bf16.msra.mxu1 %v213_v27 }
 0x12d   :  { %271 = vmatpush.bf16.msra.mxu1 %v212_v24 }
 0x131   :  { %272 = vmatpush.bf16.msra.mxu1 %v211_v21 }
 0x135   :  { %273 = vmatpush.bf16.msra.mxu1 %v210_v18 }
 0x138   :  { %274 = vmatmul.bf16.vlgmr.msra.gmra.mxu1 %v781_v40 }
 0x148   :  { %279 = vmatmul.bf16.gmra.mxu1 %v787_v41 }
 0x158   :  { %284 = vmatmul.bf16.gmra.mxu1 %v793_v42 }
 0x168   :  { %289 = vmatmul.bf16.gmra.mxu1 %v799_v43 }
 0x178   :  { %294 = vmatmul.bf16.gmra.mxu1 %v805_v44 }
 0x188   :  { %299 = vmatmul.bf16.gmra.mxu1 %v817_v47 }
 0x198   :  { %304 = vmatmul.bf16.gmra.mxu1 %v832_v51 }
 0x1a8   :  { %309 = vmatmul.bf16.gmra.mxu1 %v847_v55 }
 0x1b5   :  { %v275_v56 = vpop.f32.mrf.mxu1 }
 0x1b6   :  { %v315_v58 = vmax.f32 %v275_v56, 0.0 }
 0x1bd   :  { %v277_v57 = vpop.f32.mrf.mxu1 }
 0x1be   :  { %v316_v59 = vmax.f32 %v277_v57, 0.0 }
 0x1c0   :  { %v331_v60 = vpack.c.bf16 %v316_v59, %v315_v58 }
 0x1c2   :  { %411 = vmatmul.bf16.vlgmr.msra.gmra.mxu2 %v331_v60 }
 0x1c5   :  { %v280_v61 = vpop.f32.mrf.mxu1 }
 0x1c6   :  { %v317_v63 = vmax.f32 %v280_v61, 0.0 }
 0x1cd   :  { %v282_v62 = vpop.f32.mrf.mxu1 }
 0x1ce   :  { %v318_v0 = vmax.f32 %v282_v62, 0.0 }
 0x1d0   :  { %v332_v1 = vpack.c.bf16 %v318_v0, %v317_v63 }
 0x1d2   :  { %416 = vmatmul.bf16.gmra.mxu2 %v332_v1 }
 0x1d5   :  { %v285_v2 = vpop.f32.mrf.mxu1 }
 0x1d6   :  { %v319_v4 = vmax.f32 %v285_v2, 0.0 }
 0x1dd   :  { %v287_v3 = vpop.f32.mrf.mxu1 }
 0x1de   :  { %v320_v5 = vmax.f32 %v287_v3, 0.0 }
 0x1e0   :  { %v333_v6 = vpack.c.bf16 %v320_v5, %v319_v4 }
 0x1e2   :  { %421 = vmatmul.bf16.gmra.mxu2 %v333_v6 }
 0x1e5   :  { %v290_v7 = vpop.f32.mrf.mxu1 }
 0x1e6   :  { %v321_v9 = vmax.f32 %v290_v7, 0.0 }
 0x1ed   :  { %v292_v8 = vpop.f32.mrf.mxu1 }
 0x1ee   :  { %v322_v10 = vmax.f32 %v292_v8, 0.0 }
 0x1f0   :  { %v334_v11 = vpack.c.bf16 %v322_v10, %v321_v9 }
 0x1f2   :  { %426 = vmatmul.bf16.gmra.mxu2 %v334_v11 }
 0x1f5   :  { %v295_v12 = vpop.f32.mrf.mxu1 }
 0x1f6   :  { %v323_v14 = vmax.f32 %v295_v12, 0.0 }
 0x1fd   :  { %v297_v13 = vpop.f32.mrf.mxu1 }
 0x1fe   :  { %v324_v15 = vmax.f32 %v297_v13, 0.0 }
 0x200   :  { %v335_v16 = vpack.c.bf16 %v324_v15, %v323_v14 }
 0x202   :  { %431 = vmatmul.bf16.gmra.mxu2 %v335_v16 }
 0x205   :  { %v300_v17 = vpop.f32.mrf.mxu1 }
 0x206   :  { %v325_v19 = vmax.f32 %v300_v17, 0.0 }
 0x20d   :  { %v302_v18 = vpop.f32.mrf.mxu1 }
 0x20e   :  { %v326_v20 = vmax.f32 %v302_v18, 0.0 }
 0x210   :  { %v336_v21 = vpack.c.bf16 %v326_v20, %v325_v19 }
 0x212   :  { %436 = vmatmul.bf16.gmra.mxu2 %v336_v21 }
 0x215   :  { %v305_v22 = vpop.f32.mrf.mxu1 }
 0x216   :  { %v327_v24 = vmax.f32 %v305_v22, 0.0 }
 0x21d   :  { %v307_v23 = vpop.f32.mrf.mxu1 }
 0x21e   :  { %v328_v25 = vmax.f32 %v307_v23, 0.0 }
 0x220   :  { %v337_v26 = vpack.c.bf16 %v328_v25, %v327_v24 }
 0x222   :  { %441 = vmatmul.bf16.gmra.mxu2 %v337_v26 }
 0x225   :  { %v310_v27 = vpop.f32.mrf.mxu1 }
 0x226   :  { %v329_v29 = vmax.f32 %v310_v27, 0.0 }
 0x22d   :  { %v312_v28 = vpop.f32.mrf.mxu1 }
 0x22e   :  { %v330_v30 = vmax.f32 %v312_v28, 0.0 }
 0x230   :  { %v338_v31 = vpack.c.bf16 %v330_v30, %v329_v29 }
 0x232   :  { %446 = vmatmul.bf16.gmra.mxu2 %v338_v31 }
 0x245   :  { %v412_v32 = vpop.f32.mrf.mxu2 }
 0x24d   :  { %v414_v33 = vpop.f32.mrf.mxu2 }
 0x24e   :  { %v452_v34 = vpack.c.bf16 %v414_v33, %v412_v32 }
 0x255   :  { %v417_v35 = vpop.f32.mrf.mxu2 }
 0x25d   :  { %v419_v36 = vpop.f32.mrf.mxu2 }
 0x25e   :  { %v453_v37 = vpack.c.bf16 %v419_v36, %v417_v35 }
 0x265   :  { %v422_v38 = vpop.f32.mrf.mxu2 }
 0x26d   :  { %v424_v39 = vpop.f32.mrf.mxu2 }
 0x26e   :  { %v454_v45 = vpack.c.bf16 %v424_v39, %v422_v38 }
 0x275   :  { %v427_v46 = vpop.f32.mrf.mxu2 }
 0x27d   :  { %v429_v48 = vpop.f32.mrf.mxu2 }
 0x27e   :  { %v455_v49 = vpack.c.bf16 %v429_v48, %v427_v46 }
 0x285   :  { %v432_v50 = vpop.f32.mrf.mxu2 }
 0x28d   :  { %v434_v52 = vpop.f32.mrf.mxu2 }
 0x28e   :  { %v456_v63 = vpack.c.bf16 %v434_v52, %v432_v50 }
 0x295   :  { %v437_v53 = vpop.f32.mrf.mxu2 }
 0x29d   :  { %v439_v54 = vpop.f32.mrf.mxu2 }
 0x29e   :  { %v457_v62 = vpack.c.bf16 %v439_v54, %v437_v53 }
 0x2a5   :  { %v442_v56 = vpop.f32.mrf.mxu2 }
 0x2ad   :  { %v444_v57 = vpop.f32.mrf.mxu2 }
 0x2ae   :  { %v458_v61 = vpack.c.bf16 %v444_v57, %v442_v56 }
 0x2b5   :  { %v447_v58 = vpop.f32.mrf.mxu2 }
 0x2bd   :  { %v449_v59 = vpop.f32.mrf.mxu2 }
 0x2be   :  { %v459_v60 = vpack.c.bf16 %v449_v59, %v447_v58 }
 0x2c0   :  { %460 = vmatpush.bf16.msra.mxu3 %v459_v60 }
 0x2c4   :  { %461 = vmatpush.bf16.msra.mxu3 %v458_v61 }
 0x2c8   :  { %462 = vmatpush.bf16.msra.mxu3 %v457_v62 }
 0x2cc   :  { %463 = vmatpush.bf16.msra.mxu3 %v456_v63 }
 0x2d0   :  { %464 = vmatpush.bf16.msra.mxu3 %v455_v49 }
 0x2d4   :  { %465 = vmatpush.bf16.msra.mxu3 %v454_v45 }
 0x2d8   :  { %466 = vmatpush.bf16.msra.mxu3 %v453_v37 }
 0x2dc   :  { %467 = vmatpush.bf16.msra.mxu3 %v452_v34 }
 0x2df   :  { %468 = vmatmul.bf16.vlgmr.msra.gmra.mxu3 %v781_v40 }
 0x2ef   :  { %473 = vmatmul.bf16.gmra.mxu3 %v787_v41 }
 0x2ff   :  { %478 = vmatmul.bf16.gmra.mxu3 %v793_v42 }
 0x30f   :  { %483 = vmatmul.bf16.gmra.mxu3 %v799_v43 }
 0x31f   :  { %488 = vmatmul.bf16.gmra.mxu3 %v805_v44 }
 0x32f   :  { %493 = vmatmul.bf16.gmra.mxu3 %v817_v47 }
 0x33f   :  { %498 = vmatmul.bf16.gmra.mxu3 %v832_v51 }
 0x34f   :  { %503 = vmatmul.bf16.gmra.mxu3 %v847_v55 }
 0x362   :  { %v469_v0 = vpop.f32.mrf.mxu3 }
 0x363   :  { %v509_v1 = vmax.f32 %v469_v0, 0.0 }
 0x365   :  { %525 = vst [vmem:[%s910_s4] sm:$0xff] %v509_v1 }
 0x36a   :  { %v471_v40 = vpop.f32.mrf.mxu3 }
 0x36b   :  { %v510_v41 = vmax.f32 %v471_v40, 0.0 }
 0x36d   :  { %526 = vst [vmem:[%s910_s4 + $0x8] sm:$0xff] %v510_v41 }
 0x372   :  { %v474_v42 = vpop.f32.mrf.mxu3 }
 0x373   :  { %v511_v43 = vmax.f32 %v474_v42, 0.0 }
 0x375   :  { %527 = vst [vmem:[%s910_s4 + $0x10] sm:$0xff] %v511_v43 }
 0x37a   :  { %v476_v44 = vpop.f32.mrf.mxu3 }
 0x37b   :  { %v512_v47 = vmax.f32 %v476_v44, 0.0 }
 0x37d   :  { %528 = vst [vmem:[%s910_s4 + $0x18] sm:$0xff] %v512_v47 }
 0x382   :  { %v479_v51 = vpop.f32.mrf.mxu3 }
 0x383   :  { %v513_v55 = vmax.f32 %v479_v51, 0.0 }
 0x385   :  { %529 = vst [vmem:[%s910_s4 + $0x20] sm:$0xff] %v513_v55 }
 0x38a   :  { %v481_v2 = vpop.f32.mrf.mxu3 }
 0x38b   :  { %v514_v3 = vmax.f32 %v481_v2, 0.0 }
 0x38d   :  { %530 = vst [vmem:[%s910_s4 + $0x28] sm:$0xff] %v514_v3 }
 0x392   :  { %v484_v4 = vpop.f32.mrf.mxu3 }
 0x393   :  { %v515_v5 = vmax.f32 %v484_v4, 0.0 }
 0x395   :  { %531 = vst [vmem:[%s910_s4 + $0x30] sm:$0xff] %v515_v5 }
 0x39a   :  { %v486_v6 = vpop.f32.mrf.mxu3 }
 0x39b   :  { %v516_v7 = vmax.f32 %v486_v6, 0.0 }
 0x39d   :  { %532 = vst [vmem:[%s910_s4 + $0x38] sm:$0xff] %v516_v7 }
 0x3a2   :  { %v489_v8 = vpop.f32.mrf.mxu3 }
 0x3a3   :  { %v517_v9 = vmax.f32 %v489_v8, 0.0 }
 0x3a5   :  { %533 = vst [vmem:[%s910_s4 + $0x40] sm:$0xff] %v517_v9 }
 0x3aa   :  { %v491_v10 = vpop.f32.mrf.mxu3 }
 0x3ab   :  { %v518_v11 = vmax.f32 %v491_v10, 0.0 }
 0x3ad   :  { %534 = vst [vmem:[%s910_s4 + $0x48] sm:$0xff] %v518_v11 }
 0x3b2   :  { %v494_v12 = vpop.f32.mrf.mxu3 }
 0x3b3   :  { %v519_v13 = vmax.f32 %v494_v12, 0.0 }
 0x3b5   :  { %535 = vst [vmem:[%s910_s4 + $0x50] sm:$0xff] %v519_v13 }
 0x3ba   :  { %v496_v14 = vpop.f32.mrf.mxu3 }
 0x3bb   :  { %v520_v15 = vmax.f32 %v496_v14, 0.0 }
 0x3bd   :  { %536 = vst [vmem:[%s910_s4 + $0x58] sm:$0xff] %v520_v15 }
 0x3c2   :  { %v499_v16 = vpop.f32.mrf.mxu3 }
 0x3c3   :  { %v521_v17 = vmax.f32 %v499_v16, 0.0 }
 0x3c5   :  { %537 = vst [vmem:[%s910_s4 + $0x60] sm:$0xff] %v521_v17 }
 0x3ca   :  { %v501_v18 = vpop.f32.mrf.mxu3 }
 0x3cb   :  { %v522_v19 = vmax.f32 %v501_v18, 0.0 }
 0x3cd   :  { %538 = vst [vmem:[%s910_s4 + $0x68] sm:$0xff] %v522_v19 }
 0x3d2   :  { %v504_v20 = vpop.f32.mrf.mxu3 }
 0x3d3   :  { %v523_v21 = vmax.f32 %v504_v20, 0.0 }
 0x3d5   :  { %539 = vst [vmem:[%s910_s4 + $0x70] sm:$0xff] %v523_v21 }
 0x3da   :  { %v506_v22 = vpop.f32.mrf.mxu3 }
 0x3db   :  { %v524_v23 = vmax.f32 %v506_v22, 0.0 }
 0x3dd   :  { %540 = vst [vmem:[%s910_s4 + $0x78] sm:$0xff] %v524_v23 }

</bundles_post_ra>
